<compile_context>
chip_gen: v7x
topology: tpu7x:2x2x1
jax: 0.10.0
libtpu: 0.0.40
codegen_flags: <defaults>
</compile_context>

<pallas_src>
import functools

import jax
import jax.numpy as jnp
from jax.experimental import pallas as pl
from jax.experimental.pallas import tpu as pltpu

N_IN = 1
N_H = 20
N_OUT = 1

GP = 128            # lane padding per gate (one lane-tile)
NGATE = 4 * GP      # packed gate width, order (i, f, o, g)
NSTATE = 4 * GP     # packed state slab width: [h1 | c1 | h2 | c2]


# ----------------------------------------------------------------------------
# Kernel: one grid step == one timestep of the recurrence.
# ----------------------------------------------------------------------------
def _rnn_seq_kernel(x_ref, s0_ref, wmat_ref, vp_ref,      # inputs  (VMEM resident)
                    y_ref, sout_ref,                       # outputs
                    state_ref):                            # VMEM scratch (persists)
    t = pl.program_id(0)

    @pl.when(t == 0)
    def _init():
        state_ref[...] = s0_ref[...]

    # Resident packed parameters (all slices are 8/128 aligned).
    whh1 = wmat_ref[0 * GP:1 * GP, :]          # (GP, NGATE)
    wih2 = wmat_ref[1 * GP:2 * GP, :]          # (GP, NGATE)
    whh2 = wmat_ref[2 * GP:3 * GP, :]          # (GP, NGATE)
    wih1 = vp_ref[0:1, :]                      # (1, NGATE)   n_in == 1 row
    b1 = vp_ref[1:2, :]                        # (1, NGATE)   b_ih1 + b_hh1
    b2 = vp_ref[2:3, :]                        # (1, NGATE)   b_ih2 + b_hh2
    wl = vp_ref[3:4, 0:GP]                     # (1, GP)      linear weight row (padded)
    bl = vp_ref[3:4, GP:2 * GP]                # (1, GP)      linear bias, lane-broadcast

    # Current state (padded lanes are exactly zero).
    h1 = state_ref[:, 0 * GP:1 * GP]
    c1 = state_ref[:, 1 * GP:2 * GP]
    h2 = state_ref[:, 2 * GP:3 * GP]
    c2 = state_ref[:, 3 * GP:4 * GP]

    x_t = x_ref[t]                             # (B, 1)

    def lstm_from_gates(gates, c):
        # gate layout: [i | f | o | g], each GP lanes wide.
        sig = jax.nn.sigmoid(gates[:, 0:3 * GP])
        i = sig[:, 0:GP]
        f = sig[:, GP:2 * GP]
        o = sig[:, 2 * GP:3 * GP]
        g = jnp.tanh(gates[:, 3 * GP:4 * GP])
        c_new = f * c + i * g
        h_new = o * jnp.tanh(c_new)
        return h_new, c_new

    # LSTMCell 1: input contribution is an outer product -> VPU broadcast multiply.
    g1 = (x_t * wih1
          + jnp.dot(h1, whh1, preferred_element_type=jnp.float32)
          + b1)
    h1n, c1n = lstm_from_gates(g1, c1)

    # LSTMCell 2.
    g2 = (jnp.dot(h1n, wih2, preferred_element_type=jnp.float32)
          + jnp.dot(h2, whh2, preferred_element_type=jnp.float32)
          + b2)
    h2n, c2n = lstm_from_gates(g2, c2)

    # Linear head (n_out == 1): VPU multiply + lane reduce instead of an MXU matmul.
    # Result broadcast to a lane-dense (B, GP) slab so the writeback is unmasked.
    y = jnp.sum(h2n * wl, axis=-1, keepdims=True) + bl     # (B, 1) + (1, GP) -> (B, GP)
    y_ref[...] = y

    # Carry the state in VMEM scratch.
    state_ref[:, 0 * GP:1 * GP] = h1n
    state_ref[:, 1 * GP:2 * GP] = c1n
    state_ref[:, 2 * GP:3 * GP] = h2n
    state_ref[:, 3 * GP:4 * GP] = c2n

    @pl.when(t == pl.num_programs(0) - 1)
    def _finalize():
        sout_ref[...] = state_ref[...]


# ----------------------------------------------------------------------------
# Parameter / state packing (done once per call, outside the kernel).
# ----------------------------------------------------------------------------
def _pack_gate_cols(w, n_h):
    """PyTorch (4H, K) rows (i,f,g,o)  ->  (K, 4*GP) cols (i,f,o,g), 128-lane padded."""
    h = n_h
    i, f, g, o = w[0:h], w[h:2 * h], w[2 * h:3 * h], w[3 * h:4 * h]
    cols = [jnp.pad(blk.T, ((0, 0), (0, GP - h))) for blk in (i, f, o, g)]
    return jnp.concatenate(cols, axis=1).astype(jnp.float32)


def _pack_gate_bias(b, n_h):
    h = n_h
    i, f, g, o = b[0:h], b[h:2 * h], b[2 * h:3 * h], b[3 * h:4 * h]
    parts = [jnp.pad(blk, (0, GP - h)) for blk in (i, f, o, g)]
    return jnp.concatenate(parts).astype(jnp.float32)          # (NGATE,)


def _pad_rows(w, rows):
    return jnp.pad(w, ((0, rows - w.shape[0]), (0, 0)))


def pack_params(params, n_h=N_H):
    assert params["w_ih1"].shape[1] == 1, "optimized kernel assumes n_in == 1"
    wih1 = _pack_gate_cols(params["w_ih1"], n_h)                # (1, NGATE)
    whh1 = _pad_rows(_pack_gate_cols(params["w_hh1"], n_h), GP)  # (GP, NGATE)
    wih2 = _pad_rows(_pack_gate_cols(params["w_ih2"], n_h), GP)
    whh2 = _pad_rows(_pack_gate_cols(params["w_hh2"], n_h), GP)
    b1 = _pack_gate_bias(params["b_ih1"] + params["b_hh1"], n_h)
    b2 = _pack_gate_bias(params["b_ih2"] + params["b_hh2"], n_h)
    wl = jnp.pad(params["w_lin"][0].astype(jnp.float32), (0, GP - n_h))   # (GP,)
    bl = jnp.full((GP,), params["b_lin"][0], jnp.float32)                  # (GP,)

    wmat = jnp.concatenate([whh1, wih2, whh2], axis=0)          # (3*GP, NGATE)
    vrow3 = jnp.concatenate([wl, bl, jnp.zeros((NGATE - 2 * GP,), jnp.float32)])
    vparams = jnp.zeros((8, NGATE), jnp.float32)
    vparams = vparams.at[0].set(wih1[0])
    vparams = vparams.at[1].set(b1)
    vparams = vparams.at[2].set(b2)
    vparams = vparams.at[3].set(vrow3)
    return wmat, vparams


def _pack_state(h1, c1, h2, c2, n_h=N_H):
    pad = lambda a: jnp.pad(a.astype(jnp.float32), ((0, 0), (0, GP - n_h)))
    return jnp.concatenate([pad(h1), pad(c1), pad(h2), pad(c2)], axis=1)  # (B, NSTATE)


def _unpack_state(s, n_h=N_H):
    return (s[:, 0:n_h],
            s[:, GP:GP + n_h],
            s[:, 2 * GP:2 * GP + n_h],
            s[:, 3 * GP:3 * GP + n_h])


# ----------------------------------------------------------------------------
# Wrappers.
# ----------------------------------------------------------------------------
@jax.jit
def rnn_optimizer_forward_seq(xs, h1, c1, h2, c2, params):
    """Run T fused timesteps: xs (T, B, 1) -> (y (T, B, 1), h1, c1, h2, c2)."""
    T, B, n_in = xs.shape
    assert n_in == N_IN == 1

    wmat, vparams = pack_params(params)
    s0 = _pack_state(h1, c1, h2, c2)

    grid_spec = pltpu.PrefetchScalarGridSpec(
        num_scalar_prefetch=0,
        grid=(T,),
        in_specs=[
            pl.BlockSpec((T, B, 1), lambda t: (0, 0, 0)),        # x, fully resident
            pl.BlockSpec((B, NSTATE), lambda t: (0, 0)),         # initial state slab
            pl.BlockSpec((3 * GP, NGATE), lambda t: (0, 0)),     # matrix weights
            pl.BlockSpec((8, NGATE), lambda t: (0, 0)),          # vector params
        ],
        out_specs=(
            pl.BlockSpec((None, B, GP), lambda t: (t, 0, 0)),    # per-step lane-dense y
            pl.BlockSpec((B, NSTATE), lambda t: (0, 0)),         # final state slab
        ),
        scratch_shapes=[pltpu.VMEM((B, NSTATE), jnp.float32)],   # carried state
    )

    y_slab, s_out = pl.pallas_call(
        _rnn_seq_kernel,
        out_shape=(
            jax.ShapeDtypeStruct((T, B, GP), jnp.float32),
            jax.ShapeDtypeStruct((B, NSTATE), jnp.float32),
        ),
        grid_spec=grid_spec,
        compiler_params=pltpu.CompilerParams(
            dimension_semantics=("arbitrary",)),                 # recurrent axis
    )(xs.astype(jnp.float32), s0, wmat, vparams)

    ys = y_slab[:, :, 0:N_OUT]
    h1n, c1n, h2n, c2n = _unpack_state(s_out)
    return ys, h1n, c1n, h2n, c2n


def rnn_optimizer_forward(x, h1, c1, h2, c2, params):
    """One call of rnn_optimizer.forward(): x (B, 1) -> (out (B, 1), new states)."""
    ys, h1n, c1n, h2n, c2n = rnn_optimizer_forward_seq(x[None], h1, c1, h2, c2, params)
    return ys[0], h1n, c1n, h2n, c2n


# ----------------------------------------------------------------------------
# Init + pure-JAX reference (PyTorch LSTMCell semantics).
# ----------------------------------------------------------------------------
def init_params(key, n_in=N_IN, n_h=N_H, n_out=N_OUT):
    ks = jax.random.split(key, 10)
    k1 = 1.0 / jnp.sqrt(n_h)

    def u(k, shape, bound):
        return jax.random.uniform(k, shape, jnp.float32, -bound, bound)

    return {
        "w_ih1": u(ks[0], (4 * n_h, n_in), k1),
        "w_hh1": u(ks[1], (4 * n_h, n_h), k1),
        "b_ih1": u(ks[2], (4 * n_h,), k1),
        "b_hh1": u(ks[3], (4 * n_h,), k1),
        "w_ih2": u(ks[4], (4 * n_h, n_h), k1),
        "w_hh2": u(ks[5], (4 * n_h, n_h), k1),
        "b_ih2": u(ks[6], (4 * n_h,), k1),
        "b_hh2": u(ks[7], (4 * n_h,), k1),
        "w_lin": u(ks[8], (n_out, n_h), k1),
        "b_lin": u(ks[9], (n_out,), k1),
    }


def _reference_seq(xs, h1, c1, h2, c2, params):
    def cell(x, h, c, w_ih, w_hh, b_ih, b_hh):
        g = x @ w_ih.T + b_ih + h @ w_hh.T + b_hh
        H = h.shape[1]
        i = jax.nn.sigmoid(g[:, :H])
        f = jax.nn.sigmoid(g[:, H:2 * H])
        gg = jnp.tanh(g[:, 2 * H:3 * H])
        o = jax.nn.sigmoid(g[:, 3 * H:])
        c_new = f * c + i * gg
        return o * jnp.tanh(c_new), c_new

    ys = []
    for t in range(xs.shape[0]):
        h1, c1 = cell(xs[t], h1, c1, params["w_ih1"], params["w_hh1"],
                      params["b_ih1"], params["b_hh1"])
        h2, c2 = cell(h1, h2, c2, params["w_ih2"], params["w_hh2"],
                      params["b_ih2"], params["b_hh2"])
        ys.append(h2 @ params["w_lin"].T + params["b_lin"])
    return jnp.stack(ys), h1, c1, h2, c2


if __name__ == "__main__":
    key = jax.random.PRNGKey(0)
    k_param, k_x = jax.random.split(key)

    B, T = 8, 8
    params = init_params(k_param)
    xs = jax.random.normal(k_x, (T, B, N_IN), jnp.float32)
    zeros = jnp.zeros((B, N_H), jnp.float32)   # init_hidden(batch_size)

    # Fused multi-step path (the optimized, scanned use case).
    outs = rnn_optimizer_forward_seq(xs, zeros, zeros, zeros, zeros, params)
    outs = jax.block_until_ready(outs)

    refs = _reference_seq(xs, zeros, zeros, zeros, zeros, params)
    for name, o, r in zip(("y", "h1", "c1", "h2", "c2"), outs, refs):
        assert o.shape == r.shape, f"shape mismatch in {name}: {o.shape} vs {r.shape}"
        assert jnp.allclose(o, r, atol=3e-5, rtol=1e-4), f"value mismatch in {name}"

    # Single-step path (one module forward() call).
    out1 = rnn_optimizer_forward(xs[0], zeros, zeros, zeros, zeros, params)
    out1 = jax.block_until_ready(out1)
    assert jnp.allclose(out1[0], refs[0][0], atol=3e-5, rtol=1e-4), "single-step mismatch"

    print("KERNEL_OK")
</pallas_src>

<mosaic_0001>
module attributes {stable_mosaic.version = 11 : i64} {
  func.func @_rnn_seq_kernel(%arg0: i32, %arg1: memref<8x8x1xf32, #tpu.memory_space<vmem>>, %arg2: memref<8x512xf32, #tpu.memory_space<vmem>>, %arg3: memref<384x512xf32, #tpu.memory_space<vmem>>, %arg4: memref<8x512xf32, #tpu.memory_space<vmem>>, %arg5: memref<1x8x128xf32, #tpu.memory_space<vmem>>, %arg6: memref<8x512xf32, #tpu.memory_space<vmem>>, %arg7: memref<8x512xf32, #tpu.memory_space<vmem>>) attributes {dimension_semantics = [#tpu.dimension_semantics<arbitrary>], iteration_bounds = array<i64: 8>, scalar_prefetch = 0 : i64, scratch_operands = 1 : i64, tpu.core_type = #tpu.core_type<tc>, window_params = [{pipeline_mode = #tpu.pipeline_mode<synchronous>, transform_indices = @transform_0, window_bounds = array<i64: 8, 8, 1>}, {pipeline_mode = #tpu.pipeline_mode<synchronous>, transform_indices = @transform_1, window_bounds = array<i64: 8, 512>}, {pipeline_mode = #tpu.pipeline_mode<synchronous>, transform_indices = @transform_2, window_bounds = array<i64: 384, 512>}, {pipeline_mode = #tpu.pipeline_mode<synchronous>, transform_indices = @transform_3, window_bounds = array<i64: 8, 512>}, {transform_indices = @transform_4, window_bounds = array<i64: 1, 8, 128>}, {pipeline_mode = #tpu.pipeline_mode<synchronous>, transform_indices = @transform_5, window_bounds = array<i64: 8, 512>}]} {
    %c0_i32 = arith.constant 0 : i32
    %0 = arith.cmpi eq, %arg0, %c0_i32 : i32
    %1 = arith.extui %0 : i1 to i32
    %c0_i32_0 = arith.constant 0 : i32
    %2 = arith.cmpi ne, %1, %c0_i32_0 : i32
    scf.if %2 {
      %c0_37 = arith.constant 0 : index
      %c0_38 = arith.constant 0 : index
      %79 = vector.load %arg2[%c0_37, %c0_38] : memref<8x512xf32, #tpu.memory_space<vmem>>, vector<8x512xf32>
      %c0_39 = arith.constant 0 : index
      %c0_40 = arith.constant 0 : index
      %80 = vector.load %arg7[%c0_39, %c0_40] : memref<8x512xf32, #tpu.memory_space<vmem>>, vector<8x512xf32>
      tpu.vector_store %arg7[%c0_39, %c0_40], %79 {strides = array<i32>} : memref<8x512xf32, #tpu.memory_space<vmem>>, vector<8x512xf32>,
    } else {
    }
    %c0 = arith.constant 0 : index
    %c0_1 = arith.constant 0 : index
    %3 = vector.load %arg3[%c0, %c0_1] : memref<384x512xf32, #tpu.memory_space<vmem>>, vector<128x512xf32>
    %c128 = arith.constant 128 : index
    %c0_2 = arith.constant 0 : index
    %4 = vector.load %arg3[%c128, %c0_2] : memref<384x512xf32, #tpu.memory_space<vmem>>, vector<128x512xf32>
    %c256 = arith.constant 256 : index
    %c0_3 = arith.constant 0 : index
    %5 = vector.load %arg3[%c256, %c0_3] : memref<384x512xf32, #tpu.memory_space<vmem>>, vector<128x512xf32>
    %c0_4 = arith.constant 0 : index
    %c0_5 = arith.constant 0 : index
    %6 = vector.load %arg4[%c0_4, %c0_5] : memref<8x512xf32, #tpu.memory_space<vmem>>, vector<1x512xf32>
    %c1 = arith.constant 1 : index
    %c0_6 = arith.constant 0 : index
    %7 = vector.load %arg4[%c1, %c0_6] : memref<8x512xf32, #tpu.memory_space<vmem>>, vector<1x512xf32>
    %c2 = arith.constant 2 : index
    %c0_7 = arith.constant 0 : index
    %8 = vector.load %arg4[%c2, %c0_7] : memref<8x512xf32, #tpu.memory_space<vmem>>, vector<1x512xf32>
    %c3 = arith.constant 3 : index
    %c0_8 = arith.constant 0 : index
    %9 = vector.load %arg4[%c3, %c0_8] : memref<8x512xf32, #tpu.memory_space<vmem>>, vector<1x128xf32>
    %c3_9 = arith.constant 3 : index
    %c128_10 = arith.constant 128 : index
    %10 = vector.load %arg4[%c3_9, %c128_10] : memref<8x512xf32, #tpu.memory_space<vmem>>, vector<1x128xf32>
    %c0_11 = arith.constant 0 : index
    %c0_12 = arith.constant 0 : index
    %11 = vector.load %arg7[%c0_11, %c0_12] : memref<8x512xf32, #tpu.memory_space<vmem>>, vector<8x128xf32>
    %c0_13 = arith.constant 0 : index
    %c128_14 = arith.constant 128 : index
    %12 = vector.load %arg7[%c0_13, %c128_14] : memref<8x512xf32, #tpu.memory_space<vmem>>, vector<8x128xf32>
    %c0_15 = arith.constant 0 : index
    %c256_16 = arith.constant 256 : index
    %13 = vector.load %arg7[%c0_15, %c256_16] : memref<8x512xf32, #tpu.memory_space<vmem>>, vector<8x128xf32>
    %c0_17 = arith.constant 0 : index
    %c384 = arith.constant 384 : index
    %14 = vector.load %arg7[%c0_17, %c384] : memref<8x512xf32, #tpu.memory_space<vmem>>, vector<8x128xf32>
    %15 = arith.index_cast %arg0 : i32 to index
    %c0_18 = arith.constant 0 : index
    %c0_19 = arith.constant 0 : index
    %16 = vector.load %arg1[%15, %c0_18, %c0_19] : memref<8x8x1xf32, #tpu.memory_space<vmem>>, vector<1x8x1xf32>
    %17 = vector.shape_cast %16 : vector<1x8x1xf32> to vector<8x1xf32>
    %18 = vector.broadcast %17 : vector<8x1xf32> to vector<8x512xf32>
    %19 = vector.broadcast %6 : vector<1x512xf32> to vector<8x512xf32>
    %20 = arith.mulf %18, %19 : vector<8x512xf32>
    %cst = arith.constant dense<0.000000e+00> : vector<8x512xf32>
    %21 = tpu.matmul %11, %3, %cst {dimension_numbers = #tpu.dot_dimension_numbers<[1], [0], [0], [1], [0, 0, 1, 1], [], []>} : vector<8x128xf32>, vector<128x512xf32>, vector<8x512xf32> -> vector<8x512xf32>
    %22 = arith.addf %20, %21 : vector<8x512xf32>
    %23 = vector.broadcast %7 : vector<1x512xf32> to vector<8x512xf32>
    %24 = arith.addf %22, %23 : vector<8x512xf32>
    %25 = vector.extract_strided_slice %24 {offsets = [0, 0], sizes = [8, 384], strides = [1, 1]} : vector<8x512xf32> to vector<8x384xf32>
    %26 = arith.negf %25 : vector<8x384xf32>
    %27 = math.exp %26 : vector<8x384xf32>
    %cst_20 = arith.constant 1.000000e+00 : f32
    %28 = vector.broadcast %cst_20 : f32 to vector<8x384xf32>
    %29 = arith.addf %28, %27 : vector<8x384xf32>
    %30 = arith.divf %28, %29 : vector<8x384xf32>
    %31 = vector.extract_strided_slice %30 {offsets = [0, 0], sizes = [8, 128], strides = [1, 1]} : vector<8x384xf32> to vector<8x128xf32>
    %32 = vector.extract_strided_slice %30 {offsets = [0, 128], sizes = [8, 128], strides = [1, 1]} : vector<8x384xf32> to vector<8x128xf32>
    %33 = vector.extract_strided_slice %30 {offsets = [0, 256], sizes = [8, 128], strides = [1, 1]} : vector<8x384xf32> to vector<8x128xf32>
    %34 = vector.extract_strided_slice %24 {offsets = [0, 384], sizes = [8, 128], strides = [1, 1]} : vector<8x512xf32> to vector<8x128xf32>
    %35 = math.tanh %34 : vector<8x128xf32>
    %36 = arith.mulf %32, %12 : vector<8x128xf32>
    %37 = arith.mulf %31, %35 : vector<8x128xf32>
    %38 = arith.addf %36, %37 : vector<8x128xf32>
    %39 = math.tanh %38 : vector<8x128xf32>
    %40 = arith.mulf %33, %39 : vector<8x128xf32>
    %cst_21 = arith.constant dense<0.000000e+00> : vector<8x512xf32>
    %41 = tpu.matmul %40, %4, %cst_21 {dimension_numbers = #tpu.dot_dimension_numbers<[1], [0], [0], [1], [0, 0, 1, 1], [], []>} : vector<8x128xf32>, vector<128x512xf32>, vector<8x512xf32> -> vector<8x512xf32>
    %cst_22 = arith.constant dense<0.000000e+00> : vector<8x512xf32>
    %42 = tpu.matmul %13, %5, %cst_22 {dimension_numbers = #tpu.dot_dimension_numbers<[1], [0], [0], [1], [0, 0, 1, 1], [], []>} : vector<8x128xf32>, vector<128x512xf32>, vector<8x512xf32> -> vector<8x512xf32>
    %43 = arith.addf %41, %42 : vector<8x512xf32>
    %44 = vector.broadcast %8 : vector<1x512xf32> to vector<8x512xf32>
    %45 = arith.addf %43, %44 : vector<8x512xf32>
    %46 = vector.extract_strided_slice %45 {offsets = [0, 0], sizes = [8, 384], strides = [1, 1]} : vector<8x512xf32> to vector<8x384xf32>
    %47 = arith.negf %46 : vector<8x384xf32>
    %48 = math.exp %47 : vector<8x384xf32>
    %cst_23 = arith.constant 1.000000e+00 : f32
    %49 = vector.broadcast %cst_23 : f32 to vector<8x384xf32>
    %50 = arith.addf %49, %48 : vector<8x384xf32>
    %51 = arith.divf %49, %50 : vector<8x384xf32>
    %52 = vector.extract_strided_slice %51 {offsets = [0, 0], sizes = [8, 128], strides = [1, 1]} : vector<8x384xf32> to vector<8x128xf32>
    %53 = vector.extract_strided_slice %51 {offsets = [0, 128], sizes = [8, 128], strides = [1, 1]} : vector<8x384xf32> to vector<8x128xf32>
    %54 = vector.extract_strided_slice %51 {offsets = [0, 256], sizes = [8, 128], strides = [1, 1]} : vector<8x384xf32> to vector<8x128xf32>
    %55 = vector.extract_strided_slice %45 {offsets = [0, 384], sizes = [8, 128], strides = [1, 1]} : vector<8x512xf32> to vector<8x128xf32>
    %56 = math.tanh %55 : vector<8x128xf32>
    %57 = arith.mulf %53, %14 : vector<8x128xf32>
    %58 = arith.mulf %52, %56 : vector<8x128xf32>
    %59 = arith.addf %57, %58 : vector<8x128xf32>
    %60 = math.tanh %59 : vector<8x128xf32>
    %61 = arith.mulf %54, %60 : vector<8x128xf32>
    %62 = vector.broadcast %9 : vector<1x128xf32> to vector<8x128xf32>
    %63 = arith.mulf %61, %62 : vector<8x128xf32>
    %cst_24 = arith.constant dense<0.000000e+00> : vector<8xf32>
    %64 = vector.multi_reduction <add>, %63, %cst_24 [1] : vector<8x128xf32> to vector<8xf32>
    %65 = vector.shape_cast %64 : vector<8xf32> to vector<8x1xf32>
    %66 = vector.broadcast %65 : vector<8x1xf32> to vector<8x128xf32>
    %67 = vector.broadcast %10 : vector<1x128xf32> to vector<8x128xf32>
    %68 = arith.addf %66, %67 : vector<8x128xf32>
    %c0_25 = arith.constant 0 : index
    %c0_26 = arith.constant 0 : index
    %c0_27 = arith.constant 0 : index
    %69 = vector.load %arg5[%c0_25, %c0_26, %c0_27] : memref<1x8x128xf32, #tpu.memory_space<vmem>>, vector<1x8x128xf32>
    %70 = vector.shape_cast %69 : vector<1x8x128xf32> to vector<8x128xf32>
    %71 = vector.shape_cast %68 : vector<8x128xf32> to vector<1x8x128xf32>
    tpu.vector_store %arg5[%c0_25, %c0_26, %c0_27], %71 {strides = array<i32>} : memref<1x8x128xf32, #tpu.memory_space<vmem>>, vector<1x8x128xf32>,
    %c0_28 = arith.constant 0 : index
    %c0_29 = arith.constant 0 : index
    %72 = vector.load %arg7[%c0_28, %c0_29] : memref<8x512xf32, #tpu.memory_space<vmem>>, vector<8x128xf32>
    tpu.vector_store %arg7[%c0_28, %c0_29], %40 {strides = array<i32>} : memref<8x512xf32, #tpu.memory_space<vmem>>, vector<8x128xf32>,
    %c0_30 = arith.constant 0 : index
    %c128_31 = arith.constant 128 : index
    %73 = vector.load %arg7[%c0_30, %c128_31] : memref<8x512xf32, #tpu.memory_space<vmem>>, vector<8x128xf32>
    tpu.vector_store %arg7[%c0_30, %c128_31], %38 {strides = array<i32>} : memref<8x512xf32, #tpu.memory_space<vmem>>, vector<8x128xf32>,
    %c0_32 = arith.constant 0 : index
    %c256_33 = arith.constant 256 : index
    %74 = vector.load %arg7[%c0_32, %c256_33] : memref<8x512xf32, #tpu.memory_space<vmem>>, vector<8x128xf32>
    tpu.vector_store %arg7[%c0_32, %c256_33], %61 {strides = array<i32>} : memref<8x512xf32, #tpu.memory_space<vmem>>, vector<8x128xf32>,
    %c0_34 = arith.constant 0 : index
    %c384_35 = arith.constant 384 : index
    %75 = vector.load %arg7[%c0_34, %c384_35] : memref<8x512xf32, #tpu.memory_space<vmem>>, vector<8x128xf32>
    tpu.vector_store %arg7[%c0_34, %c384_35], %59 {strides = array<i32>} : memref<8x512xf32, #tpu.memory_space<vmem>>, vector<8x128xf32>,
    %c7_i32 = arith.constant 7 : i32
    %76 = arith.cmpi eq, %arg0, %c7_i32 : i32
    %77 = arith.extui %76 : i1 to i32
    %c0_i32_36 = arith.constant 0 : i32
    %78 = arith.cmpi ne, %77, %c0_i32_36 : i32
    scf.if %78 {
      %c0_37 = arith.constant 0 : index
      %c0_38 = arith.constant 0 : index
      %79 = vector.load %arg7[%c0_37, %c0_38] : memref<8x512xf32, #tpu.memory_space<vmem>>, vector<8x512xf32>
      %c0_39 = arith.constant 0 : index
      %c0_40 = arith.constant 0 : index
      %80 = vector.load %arg6[%c0_39, %c0_40] : memref<8x512xf32, #tpu.memory_space<vmem>>, vector<8x512xf32>
      tpu.vector_store %arg6[%c0_39, %c0_40], %79 {strides = array<i32>} : memref<8x512xf32, #tpu.memory_space<vmem>>, vector<8x512xf32>,
    } else {
    }
    return
  }
  func.func @transform_0(%arg0: i32) -> (i32, i32, i32) {
    %c0_i32 = arith.constant 0 : i32
    %c0_i32_0 = arith.constant 0 : i32
    %c0_i32_1 = arith.constant 0 : i32
    %c0_i32_2 = arith.constant 0 : i32
    return %c0_i32, %c0_i32_0, %c0_i32_1 : i32, i32, i32
  }
  func.func @transform_1(%arg0: i32) -> (i32, i32) {
    %c0_i32 = arith.constant 0 : i32
    %c0_i32_0 = arith.constant 0 : i32
    %c0_i32_1 = arith.constant 0 : i32
    return %c0_i32, %c0_i32_0 : i32, i32
  }
  func.func @transform_2(%arg0: i32) -> (i32, i32) {
    %c0_i32 = arith.constant 0 : i32
    %c0_i32_0 = arith.constant 0 : i32
    %c0_i32_1 = arith.constant 0 : i32
    return %c0_i32, %c0_i32_0 : i32, i32
  }
  func.func @transform_3(%arg0: i32) -> (i32, i32) {
    %c0_i32 = arith.constant 0 : i32
    %c0_i32_0 = arith.constant 0 : i32
    %c0_i32_1 = arith.constant 0 : i32
    return %c0_i32, %c0_i32_0 : i32, i32
  }
  func.func @transform_4(%arg0: i32) -> (i32, i32, i32) {
    %c0_i32 = arith.constant 0 : i32
    %c0_i32_0 = arith.constant 0 : i32
    %c0_i32_1 = arith.constant 0 : i32
    return %arg0, %c0_i32, %c0_i32_0 : i32, i32, i32
  }
  func.func @transform_5(%arg0: i32) -> (i32, i32) {
    %c0_i32 = arith.constant 0 : i32
    %c0_i32_0 = arith.constant 0 : i32
    %c0_i32_1 = arith.constant 0 : i32
    return %c0_i32, %c0_i32_0 : i32, i32
  }
}

</mosaic_0001>

<bundles_post_ra>
// kernel: rnn_optimizer_forward_seq.1
= control target key start
LH: loop header
LB: loop body
LE: loop exit
PB: predicated region body
PF: predicated region fallthrough
CT: control target
= control target key end

     0   :  { %s1344_s18 = smov 0   ;;  %s2012_s0 = inlined_call_operand.vmem [shape: f32[8,8,1], index: 0, kind: input, shape index: {}]   ;;  %s2013_s1 = inlined_call_operand.vmem [shape: f32[8,512], index: 1, kind: input, shape index: {}]   ;;  %s2014_s2 = inlined_call_operand.vmem [shape: f32[384,512], index: 2, kind: input, shape index: {}]   ;;  %s2015_s3 = inlined_call_operand.vmem [shape: f32[8,512], index: 3, kind: input, shape index: {}]   ;;  %s2016_s4 = inlined_call_operand.vmem [shape: f32[8,8,128], index: 4, kind: output, shape index: {0}]   ;;  %s2017_s5 = inlined_call_operand.vmem [shape: f32[8,512], index: 5, kind: output, shape index: {1}]  }
   0x1 LB: > { %s1350_s19 = sadd.s32 4294967295, %s1310_s18   ;;  %p1050_p0 = scmp.ge.s32.totalorder %s1310_s18, 1  ;;  %s1310_s18 = sphi %s1344_s18, %s16_s18  }
   0x2   : > { %p175_p1 = scmp.lt.s32.totalorder %s1310_s18, 9 }
   0x4   : > { %p176_p2 = pnand %p1050_p0, %p175_p1 }
   0x5   : > { %p197_p3 = scmp.lt.s32.totalorder (!%p176_p2), %s1350_s19, 7  ;;  %p1052_p4 = scmp.ne.s32.totalorder (!%p176_p2), %s1350_s19, 0 }
   0x6   : > { %179 = sbr.rel (%p176_p2) target bundleno = 722 (0x2d2), region = 36 }
   0xd   : > { %s198_s20 = scalar_select %p197_p3, %s1350_s19, 7 }
   0xe   : > { %204 = sbr.rel (%p1052_p4) target bundleno = 21 (0x15), region = 40  ;;  %v205_v0 = vld [vmem:[%s2013_s1] sm:$0xff] (!%p1052_p4)  ;;  %v206_v1 = vld [vmem:[%s2013_s1 + $0x8] sm:$0xff] (!%p1052_p4)  ;;  %v207_v2 = vld [vmem:[%s2013_s1 + $0x10] sm:$0xff] (!%p1052_p4) }
   0xf   : > { %s1051_s21 = sshll.u32 %s198_s20, 3  ;;  %209 = vst [vmem:[#allocation2] sm:$0xff] (!%p1052_p4), %v205_v0  ;;  %210 = vst [vmem:[#allocation2 + $0x8] sm:$0xff] (!%p1052_p4), %v206_v1  ;;  %v208_v3 = vld [vmem:[%s2013_s1 + $0x18] sm:$0xff] (!%p1052_p4) }
  0x10   : > { %s1359_s24 = scalar_lea.vmem %s2016_s4, %s1051_s21  ;;  %211 = vst [vmem:[#allocation2 + $0x10] sm:$0xff] (!%p1052_p4), %v207_v2  ;;  %212 = vst [vmem:[#allocation2 + $0x18] sm:$0xff] (!%p1052_p4), %v208_v3 }
  0x15 PF: > { %v214_v4 = vld [vmem:[%s2014_s2 + $0x8] sm:$0xff]  ;;  %v216_v6 = vld [vmem:[%s2014_s2 + $0x18] sm:$0xff]  ;;  %v213_v9 = vld [vmem:[%s2014_s2] sm:$0xff]  ;;  %v1312_v11 = vmov 0.0   ;;  %v1313_v17 = vmov 0   ;;  %s1055_s8 = sshll.u32 %s1350_s19, 3 }
  0x16   : > { %v218_v5 = vld [vmem:[%s2014_s2 + $0x28] sm:$0xff]  ;;  %v220_v8 = vld [vmem:[%s2014_s2 + $0x38] sm:$0xff]  ;;  %v217_v10 = vld [vmem:[%s2014_s2 + $0x20] sm:$0xff]  ;;  %513 = vmatprep.mubr.f32.mxu0 %v1312_v11  ;;  %584 = vmatprep.mubr.f32.mxu1 %v1312_v11  ;;  %s417_s26 = scalar_lea.vmem %s2012_s0, %s1055_s8  ;;  %p1062_p5 = scmp.ne.s32.totalorder %s1350_s19, 7 }
  0x17   : > { %v1065_v7 = vpack.c.bf16 %v218_v5, %v214_v4  ;;  %v1097_v12 = vpack.c.bf16 %v220_v8, %v216_v6  ;;  %v1067_v13 = vpack.c.bf16 %v217_v10, %v213_v9  ;;  %v215_v14 = vld [vmem:[%s2014_s2 + $0x10] sm:$0xff]  ;;  %v222_v16 = vld [vmem:[%s2014_s2 + $0x48] sm:$0xff]  ;;  %1271 = vset.pattern.permute.xlu0 %v1313_v17  ;;  %v224_v20 = vld [vmem:[%s2014_s2 + $0x58] sm:$0xff] }
  0x18   : > { %v219_v15 = vld [vmem:[%s2014_s2 + $0x30] sm:$0xff]  ;;  %v226_v19 = vld [vmem:[%s2014_s2 + $0x68] sm:$0xff]  ;;  %v228_v21 = vld [vmem:[%s2014_s2 + $0x78] sm:$0xff] }
  0x19   : > { %1066 = vmatprep.subr.bf16.mxu0 %v1065_v7  ;;  %v1099_v18 = vpack.c.bf16 %v219_v15, %v215_v14  ;;  %1098 = vmatprep.subr.bf16.mxu1 %v1097_v12  ;;  %v1069_v22 = vpack.c.bf16 %v226_v19, %v222_v16  ;;  %v1101_v23 = vpack.c.bf16 %v228_v21, %v224_v20  ;;  %v221_v24 = vld [vmem:[%s2014_s2 + $0x40] sm:$0xff]  ;;  %v223_v26 = vld [vmem:[%s2014_s2 + $0x50] sm:$0xff]  ;;  %v230_v29 = vld [vmem:[%s2014_s2 + $0x88] sm:$0xff] }
  0x1a   : > { %1068 = vmatpush1.bf16.msra.mxu0 %v1067_v13  ;;  %v225_v25 = vld [vmem:[%s2014_s2 + $0x60] sm:$0xff]  ;;  %v227_v28 = vld [vmem:[%s2014_s2 + $0x70] sm:$0xff]  ;;  %v234_v30 = vld [vmem:[%s2014_s2 + $0xa8] sm:$0xff] }
  0x1b   : > { %1100 = vmatpush1.bf16.msra.mxu1 %v1099_v18  ;;  %v1071_v27 = vpack.c.bf16 %v225_v25, %v221_v24  ;;  %1070 = vmatprep.subr.bf16.mxu0 %v1069_v22  ;;  %v1103_v31 = vpack.c.bf16 %v227_v28, %v223_v26  ;;  %v1073_v32 = vpack.c.bf16 %v234_v30, %v230_v29  ;;  %v232_v33 = vld [vmem:[%s2014_s2 + $0x98] sm:$0xff]  ;;  %v229_v35 = vld [vmem:[%s2014_s2 + $0x80] sm:$0xff]  ;;  %v231_v38 = vld [vmem:[%s2014_s2 + $0x90] sm:$0xff] }
  0x1c   : > { %1102 = vmatprep.subr.bf16.mxu1 %v1101_v23  ;;  %v236_v34 = vld [vmem:[%s2014_s2 + $0xb8] sm:$0xff]  ;;  %v233_v37 = vld [vmem:[%s2014_s2 + $0xa0] sm:$0xff]  ;;  %v235_v39 = vld [vmem:[%s2014_s2 + $0xb0] sm:$0xff] }
  0x1d   : > { %v1105_v36 = vpack.c.bf16 %v236_v34, %v232_v33  ;;  %v1075_v40 = vpack.c.bf16 %v233_v37, %v229_v35  ;;  %v238_v41 = vld [vmem:[%s2014_s2 + $0xc8] sm:$0xff]  ;;  %v240_v43 = vld [vmem:[%s2014_s2 + $0xd8] sm:$0xff]  ;;  %v1107_v44 = vpack.c.bf16 %v235_v39, %v231_v38  ;;  %v237_v47 = vld [vmem:[%s2014_s2 + $0xc0] sm:$0xff] }
  0x1e   : > { %1072 = vmatpush1.bf16.msra.mxu0 %v1071_v27  ;;  %v242_v42 = vld [vmem:[%s2014_s2 + $0xe8] sm:$0xff]  ;;  %v244_v46 = vld [vmem:[%s2014_s2 + $0xf8] sm:$0xff]  ;;  %v241_v48 = vld [vmem:[%s2014_s2 + $0xe0] sm:$0xff] }
  0x1f   : > { %1104 = vmatpush1.bf16.msra.mxu1 %v1103_v31  ;;  %1074 = vmatprep.subr.bf16.mxu0 %v1073_v32  ;;  %v1077_v45 = vpack.c.bf16 %v242_v42, %v238_v41  ;;  %v1109_v49 = vpack.c.bf16 %v244_v46, %v240_v43  ;;  %v239_v50 = vld [vmem:[%s2014_s2 + $0xd0] sm:$0xff]  ;;  %v246_v52 = vld [vmem:[%s2014_s2 + $0x108] sm:$0xff]  ;;  %v248_v54 = vld [vmem:[%s2014_s2 + $0x118] sm:$0xff]  ;;  %v1079_v56 = vpack.c.bf16 %v241_v48, %v237_v47 }
  0x20   : > { %1106 = vmatprep.subr.bf16.mxu1 %v1105_v36  ;;  %v243_v51 = vld [vmem:[%s2014_s2 + $0xf0] sm:$0xff]  ;;  %v250_v53 = vld [vmem:[%s2014_s2 + $0x128] sm:$0xff]  ;;  %v252_v55 = vld [vmem:[%s2014_s2 + $0x138] sm:$0xff] }
  0x21   : > { %v1111_v57 = vpack.c.bf16 %v243_v51, %v239_v50  ;;  %v1081_v58 = vpack.c.bf16 %v250_v53, %v246_v52  ;;  %v245_v59 = vld [vmem:[%s2014_s2 + $0x100] sm:$0xff]  ;;  %v247_v61 = vld [vmem:[%s2014_s2 + $0x110] sm:$0xff]  ;;  %v1113_v62 = vpack.c.bf16 %v252_v55, %v248_v54  ;;  %v254_v0 = vld [vmem:[%s2014_s2 + $0x148] sm:$0xff] }
  0x22   : > { %1076 = vmatpush1.bf16.msra.mxu0 %v1075_v40  ;;  %v249_v60 = vld [vmem:[%s2014_s2 + $0x120] sm:$0xff]  ;;  %v251_v63 = vld [vmem:[%s2014_s2 + $0x130] sm:$0xff]  ;;  %v258_v1 = vld [vmem:[%s2014_s2 + $0x168] sm:$0xff] }
  0x23   : > { %1108 = vmatpush1.bf16.msra.mxu1 %v1107_v44  ;;  %1078 = vmatprep.subr.bf16.mxu0 %v1077_v45  ;;  %v256_v2 = vld [vmem:[%s2014_s2 + $0x158] sm:$0xff]  ;;  %v1083_v4 = vpack.c.bf16 %v249_v60, %v245_v59  ;;  %v1115_v5 = vpack.c.bf16 %v251_v63, %v247_v61  ;;  %v1085_v6 = vpack.c.bf16 %v258_v1, %v254_v0  ;;  %v253_v7 = vld [vmem:[%s2014_s2 + $0x140] sm:$0xff]  ;;  %v255_v9 = vld [vmem:[%s2014_s2 + $0x150] sm:$0xff] }
  0x24   : > { %1110 = vmatprep.subr.bf16.mxu1 %v1109_v49  ;;  %v260_v3 = vld [vmem:[%s2014_s2 + $0x178] sm:$0xff]  ;;  %v257_v8 = vld [vmem:[%s2014_s2 + $0x160] sm:$0xff]  ;;  %v259_v12 = vld [vmem:[%s2014_s2 + $0x170] sm:$0xff] }
  0x25   : > { %v1117_v10 = vpack.c.bf16 %v260_v3, %v256_v2  ;;  %v262_v13 = vld [vmem:[%s2014_s2 + $0x188] sm:$0xff]  ;;  %v264_v15 = vld [vmem:[%s2014_s2 + $0x198] sm:$0xff]  ;;  %v1087_v17 = vpack.c.bf16 %v257_v8, %v253_v7  ;;  %v261_v18 = vld [vmem:[%s2014_s2 + $0x180] sm:$0xff]  ;;  %v1119_v19 = vpack.c.bf16 %v259_v12, %v255_v9 }
  0x26   : > { %1080 = vmatpush1.bf16.msra.mxu0 %v1079_v56  ;;  %v266_v14 = vld [vmem:[%s2014_s2 + $0x1a8] sm:$0xff]  ;;  %v268_v16 = vld [vmem:[%s2014_s2 + $0x1b8] sm:$0xff]  ;;  %v265_v21 = vld [vmem:[%s2014_s2 + $0x1a0] sm:$0xff] }
  0x27   : > { %1112 = vmatpush1.bf16.msra.mxu1 %v1111_v57  ;;  %1082 = vmatprep.subr.bf16.mxu0 %v1081_v58  ;;  %v1089_v20 = vpack.c.bf16 %v266_v14, %v262_v13  ;;  %v263_v22 = vld [vmem:[%s2014_s2 + $0x190] sm:$0xff]  ;;  %v418_v23 = vld [vmem:[%s417_s26] sm:$0xff]  ;;  %v1121_v24 = vpack.c.bf16 %v268_v16, %v264_v15  ;;  %v270_v26 = vld [vmem:[%s2014_s2 + $0x1c8] sm:$0xff]  ;;  %v1091_v30 = vpack.c.bf16 %v265_v21, %v261_v18 }
  0x28   : > { %1114 = vmatprep.subr.bf16.mxu1 %v1113_v62  ;;  %v267_v25 = vld [vmem:[%s2014_s2 + $0x1b0] sm:$0xff]  ;;  %v274_v27 = vld [vmem:[%s2014_s2 + $0x1e8] sm:$0xff]  ;;  %421 = vperm.xlu0 %1271, %v418_v23   ;;  %v272_v28 = vld [vmem:[%s2014_s2 + $0x1d8] sm:$0xff] }
  0x29   : > { %v276_v29 = vld [vmem:[%s2014_s2 + $0x1f8] sm:$0xff]  ;;  %v1123_v31 = vpack.c.bf16 %v267_v25, %v263_v22  ;;  %v1093_v32 = vpack.c.bf16 %v274_v27, %v270_v26  ;;  %v269_v33 = vld [vmem:[%s2014_s2 + $0x1c0] sm:$0xff]  ;;  %v271_v35 = vld [vmem:[%s2014_s2 + $0x1d0] sm:$0xff] }
  0x2a   : > { %1084 = vmatpush1.bf16.msra.mxu0 %v1083_v4  ;;  %v273_v34 = vld [vmem:[%s2014_s2 + $0x1e0] sm:$0xff]  ;;  %v1125_v36 = vpack.c.bf16 %v276_v29, %v272_v28  ;;  %v275_v37 = vld [vmem:[%s2014_s2 + $0x1f0] sm:$0xff]  ;;  %v342_v38 = vld [vmem:[%s2014_s2 + $0x408] sm:$0xff] }
  0x2b   : > { %1116 = vmatpush1.bf16.msra.mxu1 %v1115_v5  ;;  %1086 = vmatprep.subr.bf16.mxu0 %v1085_v6  ;;  %v346_v39 = vld [vmem:[%s2014_s2 + $0x428] sm:$0xff]  ;;  %v344_v40 = vld [vmem:[%s2014_s2 + $0x418] sm:$0xff]  ;;  %v1095_v42 = vpack.c.bf16 %v273_v34, %v269_v33  ;;  %v1127_v43 = vpack.c.bf16 %v275_v37, %v271_v35  ;;  %v341_v45 = vld [vmem:[%s2014_s2 + $0x400] sm:$0xff] }
  0x2c   : > { %1118 = vmatprep.subr.bf16.mxu1 %v1117_v10  ;;  %v348_v41 = vld [vmem:[%s2014_s2 + $0x438] sm:$0xff]  ;;  %v1129_v44 = vpack.c.bf16 %v346_v39, %v342_v38  ;;  %v345_v46 = vld [vmem:[%s2014_s2 + $0x420] sm:$0xff]  ;;  %v343_v47 = vld [vmem:[%s2014_s2 + $0x410] sm:$0xff] }
  0x2d   : > { %v1161_v48 = vpack.c.bf16 %v348_v41, %v344_v40  ;;  %v347_v49 = vld [vmem:[%s2014_s2 + $0x430] sm:$0xff]  ;;  %v350_v50 = vld [vmem:[%s2014_s2 + $0x448] sm:$0xff]  ;;  %v352_v52 = vld [vmem:[%s2014_s2 + $0x458] sm:$0xff]  ;;  %v1131_v55 = vpack.c.bf16 %v345_v46, %v341_v45 }
  0x2e   : > { %1088 = vmatpush1.bf16.msra.mxu0 %v1087_v17  ;;  %v354_v51 = vld [vmem:[%s2014_s2 + $0x468] sm:$0xff]  ;;  %v356_v53 = vld [vmem:[%s2014_s2 + $0x478] sm:$0xff]  ;;  %v412_v54 = vld [vmem:[#allocation2] sm:$0xff]  ;;  %v1163_v56 = vpack.c.bf16 %v347_v49, %v343_v47 }
  0x2f   : > { %1120 = vmatpush1.bf16.msra.mxu1 %v1119_v19  ;;  %1090 = vmatprep.subr.bf16.mxu0 %v1089_v20  ;;  %v1133_v57 = vpack.c.bf16 %v354_v51, %v350_v50  ;;  %v349_v58 = vld [vmem:[%s2014_s2 + $0x440] sm:$0xff]  ;;  %v351_v60 = vld [vmem:[%s2014_s2 + $0x450] sm:$0xff]  ;;  %v1165_v61 = vpack.c.bf16 %v356_v53, %v352_v52  ;;  %v358_v63 = vld [vmem:[%s2014_s2 + $0x488] sm:$0xff] }
  0x30   : > { %1122 = vmatprep.subr.bf16.mxu1 %v1121_v24  ;;  %v353_v59 = vld [vmem:[%s2014_s2 + $0x460] sm:$0xff]  ;;  %v355_v62 = vld [vmem:[%s2014_s2 + $0x470] sm:$0xff]  ;;  %v362_v0 = vld [vmem:[%s2014_s2 + $0x4a8] sm:$0xff] }
  0x31   : > { %v360_v1 = vld [vmem:[%s2014_s2 + $0x498] sm:$0xff]  ;;  %v1135_v3 = vpack.c.bf16 %v353_v59, %v349_v58  ;;  %v1167_v4 = vpack.c.bf16 %v355_v62, %v351_v60  ;;  %v1137_v5 = vpack.c.bf16 %v362_v0, %v358_v63  ;;  %v357_v6 = vld [vmem:[%s2014_s2 + $0x480] sm:$0xff]  ;;  %v359_v8 = vld [vmem:[%s2014_s2 + $0x490] sm:$0xff] }
  0x32   : > { %1092 = vmatpush1.bf16.msra.mxu0 %v1091_v30  ;;  %v364_v2 = vld [vmem:[%s2014_s2 + $0x4b8] sm:$0xff]  ;;  %v361_v7 = vld [vmem:[%s2014_s2 + $0x4a0] sm:$0xff]  ;;  %v363_v10 = vld [vmem:[%s2014_s2 + $0x4b0] sm:$0xff] }
  0x33   : > { %1124 = vmatpush1.bf16.msra.mxu1 %v1123_v31  ;;  %1094 = vmatprep.subr.bf16.mxu0 %v1093_v32  ;;  %v1169_v9 = vpack.c.bf16 %v364_v2, %v360_v1  ;;  %v366_v12 = vld [vmem:[%s2014_s2 + $0x4c8] sm:$0xff]  ;;  %v368_v14 = vld [vmem:[%s2014_s2 + $0x4d8] sm:$0xff]  ;;  %v1139_v16 = vpack.c.bf16 %v361_v7, %v357_v6  ;;  %v1171_v17 = vpack.c.bf16 %v363_v10, %v359_v8  ;;  %v365_v19 = vld [vmem:[%s2014_s2 + $0x4c0] sm:$0xff] }
  0x34   : > { %1126 = vmatprep.subr.bf16.mxu1 %v1125_v36  ;;  %v370_v13 = vld [vmem:[%s2014_s2 + $0x4e8] sm:$0xff]  ;;  %v372_v15 = vld [vmem:[%s2014_s2 + $0x4f8] sm:$0xff]  ;;  %v369_v20 = vld [vmem:[%s2014_s2 + $0x4e0] sm:$0xff] }
  0x35   : > { %v1141_v18 = vpack.c.bf16 %v370_v13, %v366_v12  ;;  %v1173_v21 = vpack.c.bf16 %v372_v15, %v368_v14  ;;  %v367_v22 = vld [vmem:[%s2014_s2 + $0x4d0] sm:$0xff]  ;;  %v1143_v24 = vpack.c.bf16 %v369_v20, %v365_v19  ;;  %v374_v26 = vld [vmem:[%s2014_s2 + $0x508] sm:$0xff]  ;;  %v376_v28 = vld [vmem:[%s2014_s2 + $0x518] sm:$0xff] }
  0x36   : > { %1096 = vmatpush1.bf16.msra.mxu0 %v1095_v42  ;;  %v371_v23 = vld [vmem:[%s2014_s2 + $0x4f0] sm:$0xff]  ;;  %v378_v27 = vld [vmem:[%s2014_s2 + $0x528] sm:$0xff]  ;;  %v380_v30 = vld [vmem:[%s2014_s2 + $0x538] sm:$0xff] }
  0x37   : > { %1128 = vmatpush1.bf16.msra.mxu1 %v1127_v43  ;;  %1130 = vmatprep.subr.bf16.mxu0 %v1129_v44  ;;  %v1175_v25 = vpack.c.bf16 %v371_v23, %v367_v22  ;;  %v1145_v29 = vpack.c.bf16 %v378_v27, %v374_v26  ;;  %v373_v31 = vld [vmem:[%s2014_s2 + $0x500] sm:$0xff]  ;;  %v1177_v33 = vpack.c.bf16 %v380_v30, %v376_v28  ;;  %v375_v35 = vld [vmem:[%s2014_s2 + $0x510] sm:$0xff]  ;;  %v382_v38 = vld [vmem:[%s2014_s2 + $0x548] sm:$0xff] }
  0x38   : > { %1162 = vmatprep.subr.bf16.mxu1 %v1161_v48  ;;  %v377_v32 = vld [vmem:[%s2014_s2 + $0x520] sm:$0xff]  ;;  %v379_v36 = vld [vmem:[%s2014_s2 + $0x530] sm:$0xff]  ;;  %v386_v39 = vld [vmem:[%s2014_s2 + $0x568] sm:$0xff] }
  0x39   : > { %514 = vmatmul.mubr.f32.vlgmr.msra.gmra.mrb[0].mxu0 %v412_v54  ;;  %v1147_v34 = vpack.c.bf16 %v377_v32, %v373_v31  ;;  %v1179_v37 = vpack.c.bf16 %v379_v36, %v375_v35  ;;  %v384_v40 = vld [vmem:[%s2014_s2 + $0x558] sm:$0xff]  ;;  %v1149_v41 = vpack.c.bf16 %v386_v39, %v382_v38  ;;  %v381_v43 = vld [vmem:[%s2014_s2 + $0x540] sm:$0xff]  ;;  %v383_v47 = vld [vmem:[%s2014_s2 + $0x550] sm:$0xff] }
  0x3a   : > { %585 = vmatmul.mubr.f32.vlgmr.msra.gmra.mrb[0].mxu1 %v412_v54  ;;  %1132 = vmatpush1.bf16.msra.mxu0 %v1131_v55  ;;  %v388_v42 = vld [vmem:[%s2014_s2 + $0x578] sm:$0xff]  ;;  %v385_v44 = vld [vmem:[%s2014_s2 + $0x560] sm:$0xff]  ;;  %v387_v48 = vld [vmem:[%s2014_s2 + $0x570] sm:$0xff] }
  0x3b   : > { %1164 = vmatpush1.bf16.msra.mxu1 %v1163_v56  ;;  %1134 = vmatprep.subr.bf16.mxu0 %v1133_v57  ;;  %v1181_v45 = vpack.c.bf16 %v388_v42, %v384_v40  ;;  %v1151_v46 = vpack.c.bf16 %v385_v44, %v381_v43  ;;  %v1183_v49 = vpack.c.bf16 %v387_v48, %v383_v47  ;;  %v390_v50 = vld [vmem:[%s2014_s2 + $0x588] sm:$0xff]  ;;  %v392_v52 = vld [vmem:[%s2014_s2 + $0x598] sm:$0xff]  ;;  %v389_v55 = vld [vmem:[%s2014_s2 + $0x580] sm:$0xff] }
  0x3c   : > { %1166 = vmatprep.subr.bf16.mxu1 %v1165_v61  ;;  %708 = vmatprep.mubr.f32.mxu0 %v1312_v11  ;;  %v394_v51 = vld [vmem:[%s2014_s2 + $0x5a8] sm:$0xff]  ;;  %v396_v54 = vld [vmem:[%s2014_s2 + $0x5b8] sm:$0xff]  ;;  %v393_v56 = vld [vmem:[%s2014_s2 + $0x5a0] sm:$0xff] }
  0x3d   : > { %779 = vmatprep.mubr.f32.mxu1 %v1312_v11  ;;  %v1153_v53 = vpack.c.bf16 %v394_v51, %v390_v50  ;;  %v1185_v57 = vpack.c.bf16 %v396_v54, %v392_v52  ;;  %v1155_v58 = vpack.c.bf16 %v393_v56, %v389_v55  ;;  %v391_v59 = vld [vmem:[%s2014_s2 + $0x590] sm:$0xff]  ;;  %v398_v62 = vld [vmem:[%s2014_s2 + $0x5c8] sm:$0xff]  ;;  %v400_v0 = vld [vmem:[%s2014_s2 + $0x5d8] sm:$0xff] }
  0x3e   : > { %1136 = vmatpush1.bf16.msra.mxu0 %v1135_v3  ;;  %v395_v60 = vld [vmem:[%s2014_s2 + $0x5b0] sm:$0xff]  ;;  %v402_v63 = vld [vmem:[%s2014_s2 + $0x5e8] sm:$0xff]  ;;  %v404_v2 = vld [vmem:[%s2014_s2 + $0x5f8] sm:$0xff] }
  0x3f   : > { %1168 = vmatpush1.bf16.msra.mxu1 %v1167_v4  ;;  %1138 = vmatprep.subr.bf16.mxu0 %v1137_v5  ;;  %v1187_v61 = vpack.c.bf16 %v395_v60, %v391_v59  ;;  %v1157_v1 = vpack.c.bf16 %v402_v63, %v398_v62  ;;  %v397_v3 = vld [vmem:[%s2014_s2 + $0x5c0] sm:$0xff]  ;;  %v1189_v5 = vpack.c.bf16 %v404_v2, %v400_v0  ;;  %v399_v7 = vld [vmem:[%s2014_s2 + $0x5d0] sm:$0xff]  ;;  %v278_v10 = vld [vmem:[%s2014_s2 + $0x208] sm:$0xff] }
  0x40   : > { %1170 = vmatprep.subr.bf16.mxu1 %v1169_v9  ;;  %v401_v4 = vld [vmem:[%s2014_s2 + $0x5e0] sm:$0xff]  ;;  %v403_v8 = vld [vmem:[%s2014_s2 + $0x5f0] sm:$0xff]  ;;  %v282_v12 = vld [vmem:[%s2014_s2 + $0x228] sm:$0xff] }
  0x41   : > { %v1159_v6 = vpack.c.bf16 %v401_v4, %v397_v3  ;;  %v1191_v9 = vpack.c.bf16 %v403_v8, %v399_v7  ;;  %v280_v13 = vld [vmem:[%s2014_s2 + $0x218] sm:$0xff]  ;;  %v1193_v14 = vpack.c.bf16 %v282_v12, %v278_v10  ;;  %v279_v20 = vld [vmem:[%s2014_s2 + $0x210] sm:$0xff]  ;;  %v289_v30 = vld [vmem:[%s2014_s2 + $0x260] sm:$0xff] }
  0x42   : > { %1140 = vmatpush1.bf16.msra.mxu0 %v1139_v16  ;;  %v284_v15 = vld [vmem:[%s2014_s2 + $0x238] sm:$0xff]  ;;  %v277_v16 = vld [vmem:[%s2014_s2 + $0x200] sm:$0xff]  ;;  %v414_v22 = vld [vmem:[#allocation2 + $0x10] sm:$0xff] }
  0x43   : > { %1172 = vmatpush1.bf16.msra.mxu1 %v1171_v17  ;;  %1142 = vmatprep.subr.bf16.mxu0 %v1141_v18  ;;  %v281_v17 = vld [vmem:[%s2014_s2 + $0x220] sm:$0xff]  ;;  %v1225_v18 = vpack.c.bf16 %v284_v15, %v280_v13  ;;  %v288_v26 = vld [vmem:[%s2014_s2 + $0x258] sm:$0xff]  ;;  %v294_v36 = vld [vmem:[%s2014_s2 + $0x288] sm:$0xff] }
  0x44   : > { %1174 = vmatprep.subr.bf16.mxu1 %v1173_v21  ;;  %v1195_v19 = vpack.c.bf16 %v281_v17, %v277_v16  ;;  %v283_v21 = vld [vmem:[%s2014_s2 + $0x230] sm:$0xff]  ;;  %v292_v28 = vld [vmem:[%s2014_s2 + $0x278] sm:$0xff]  ;;  %v302_v47 = vld [vmem:[%s2014_s2 + $0x2c8] sm:$0xff] }
  0x45   : > { %v1227_v23 = vpack.c.bf16 %v283_v21, %v279_v20  ;;  %v1229_v31 = vpack.c.bf16 %v292_v28, %v288_v26  ;;  %v296_v38 = vld [vmem:[%s2014_s2 + $0x298] sm:$0xff]  ;;  %v295_v44 = vld [vmem:[%s2014_s2 + $0x290] sm:$0xff]  ;;  %v306_v48 = vld [vmem:[%s2014_s2 + $0x2e8] sm:$0xff] }
  0x46   : > { %1144 = vmatpush1.bf16.msra.mxu0 %v1143_v24  ;;  %v286_v24 = vld [vmem:[%s2014_s2 + $0x248] sm:$0xff]  ;;  %v300_v40 = vld [vmem:[%s2014_s2 + $0x2b8] sm:$0xff]  ;;  %v1205_v50 = vpack.c.bf16 %v306_v48, %v302_v47  ;;  %v301_v52 = vld [vmem:[%s2014_s2 + $0x2c0] sm:$0xff] }
  0x47   : > { %1176 = vmatpush1.bf16.msra.mxu1 %v1175_v25  ;;  %1146 = vmatprep.subr.bf16.mxu0 %v1145_v29  ;;  %v290_v25 = vld [vmem:[%s2014_s2 + $0x268] sm:$0xff]  ;;  %v285_v29 = vld [vmem:[%s2014_s2 + $0x240] sm:$0xff]  ;;  %v1233_v42 = vpack.c.bf16 %v300_v40, %v296_v38  ;;  %v308_v51 = vld [vmem:[%s2014_s2 + $0x2f8] sm:$0xff] }
  0x48   : > { %1178 = vmatprep.subr.bf16.mxu1 %v1177_v33  ;;  %v1197_v27 = vpack.c.bf16 %v290_v25, %v286_v24  ;;  %v1199_v32 = vpack.c.bf16 %v289_v30, %v285_v29  ;;  %v287_v33 = vld [vmem:[%s2014_s2 + $0x250] sm:$0xff]  ;;  %v310_v59 = vld [vmem:[%s2014_s2 + $0x308] sm:$0xff]  ;;  %v316_v63 = vld [vmem:[%s2014_s2 + $0x338] sm:$0xff] }
  0x49   : > { %v303_v54 = vld [vmem:[%s2014_s2 + $0x2d0] sm:$0xff]  ;;  %v314_v60 = vld [vmem:[%s2014_s2 + $0x328] sm:$0xff]  ;;  %v309_v0 = vld [vmem:[%s2014_s2 + $0x300] sm:$0xff] }
  0x4a   : > { %1148 = vmatpush1.bf16.msra.mxu0 %v1147_v34  ;;  %v291_v34 = vld [vmem:[%s2014_s2 + $0x270] sm:$0xff]  ;;  %v1209_v62 = vpack.c.bf16 %v314_v60, %v310_v59  ;;  %v318_v7 = vld [vmem:[%s2014_s2 + $0x348] sm:$0xff]  ;;  %v324_v12 = vld [vmem:[%s2014_s2 + $0x378] sm:$0xff] }
  0x4b   : > { %1180 = vmatpush1.bf16.msra.mxu1 %v1179_v37  ;;  %1150 = vmatprep.subr.bf16.mxu0 %v1149_v41  ;;  %v1231_v35 = vpack.c.bf16 %v291_v34, %v287_v33  ;;  %v298_v37 = vld [vmem:[%s2014_s2 + $0x2a8] sm:$0xff]  ;;  %v297_v41 = vld [vmem:[%s2014_s2 + $0x2a0] sm:$0xff]  ;;  %v307_v55 = vld [vmem:[%s2014_s2 + $0x2f0] sm:$0xff] }
  0x4c   : > { %1182 = vmatprep.subr.bf16.mxu1 %v1181_v45  ;;  %v1201_v39 = vpack.c.bf16 %v298_v37, %v294_v36  ;;  %v299_v45 = vld [vmem:[%s2014_s2 + $0x2b0] sm:$0xff]  ;;  %v322_v8 = vld [vmem:[%s2014_s2 + $0x368] sm:$0xff]  ;;  %v317_v13 = vld [vmem:[%s2014_s2 + $0x340] sm:$0xff] }
  0x4d   : > { %v311_v4 = vld [vmem:[%s2014_s2 + $0x310] sm:$0xff]  ;;  %v1213_v10 = vpack.c.bf16 %v322_v8, %v318_v7  ;;  %v330_v21 = vld [vmem:[%s2014_s2 + $0x3a8] sm:$0xff]  ;;  %v325_v26 = vld [vmem:[%s2014_s2 + $0x380] sm:$0xff] }
  0x4e   : > { %1152 = vmatpush1.bf16.msra.mxu0 %v1151_v46  ;;  %v1235_v46 = vpack.c.bf16 %v299_v45, %v295_v44  ;;  %v319_v17 = vld [vmem:[%s2014_s2 + $0x350] sm:$0xff]  ;;  %v334_v30 = vld [vmem:[%s2014_s2 + $0x3c8] sm:$0xff]  ;;  %v336_v33 = vld [vmem:[%s2014_s2 + $0x3d8] sm:$0xff] }
  0x4f   : > { %1184 = vmatpush1.bf16.msra.mxu1 %v1183_v49  ;;  %1154 = vmatprep.subr.bf16.mxu0 %v1153_v53  ;;  %v304_v49 = vld [vmem:[%s2014_s2 + $0x2d8] sm:$0xff]  ;;  %v305_v53 = vld [vmem:[%s2014_s2 + $0x2e0] sm:$0xff]  ;;  %v327_v28 = vld [vmem:[%s2014_s2 + $0x390] sm:$0xff] }
  0x50   : > { %1186 = vmatprep.subr.bf16.mxu1 %v1185_v57  ;;  %v1237_v56 = vpack.c.bf16 %v308_v51, %v304_v49  ;;  %v1207_v57 = vpack.c.bf16 %v305_v53, %v301_v52  ;;  %v331_v29 = vld [vmem:[%s2014_s2 + $0x3b0] sm:$0xff]  ;;  %v340_v34 = vld [vmem:[%s2014_s2 + $0x3f8] sm:$0xff]  ;;  %v333_v37 = vld [vmem:[%s2014_s2 + $0x3c0] sm:$0xff] }
  0x51   : > { %v337_v38 = vld [vmem:[%s2014_s2 + $0x3e0] sm:$0xff]  ;;  %v335_v40 = vld [vmem:[%s2014_s2 + $0x3d0] sm:$0xff] }
  0x52   : > { %1156 = vmatpush1.bf16.msra.mxu0 %v1155_v58  ;;  %v1239_v58 = vpack.c.bf16 %v307_v55, %v303_v54  ;;  %v1053_v52 = vld [vmem:[%s2015_s3 + $0x1] ss:$8 sm:$0xf] }
  0x53   : > { %1188 = vmatpush1.bf16.msra.mxu1 %v1187_v61  ;;  %1158 = vmatprep.subr.bf16.mxu0 %v1157_v1  ;;  %v312_v61 = vld [vmem:[%s2014_s2 + $0x318] sm:$0xff]  ;;  %v313_v1 = vld [vmem:[%s2014_s2 + $0x320] sm:$0xff] }
  0x54   : > { %1190 = vmatprep.subr.bf16.mxu1 %v1189_v5  ;;  %v1241_v2 = vpack.c.bf16 %v316_v63, %v312_v61  ;;  %v1211_v3 = vpack.c.bf16 %v313_v1, %v309_v0  ;;  %v315_v5 = vld [vmem:[%s2014_s2 + $0x330] sm:$0xff] }
  0x56   : > { %1160 = vmatpush1.bf16.msra.mxu0 %v1159_v6  ;;  %v1243_v6 = vpack.c.bf16 %v315_v5, %v311_v4 }
  0x57   : > { %1192 = vmatpush1.bf16.msra.mxu1 %v1191_v9  ;;  %1194 = vmatprep.subr.bf16.mxu0 %v1193_v14  ;;  %v320_v9 = vld [vmem:[%s2014_s2 + $0x358] sm:$0xff]  ;;  %v321_v14 = vld [vmem:[%s2014_s2 + $0x360] sm:$0xff] }
  0x58   : > { %1226 = vmatprep.subr.bf16.mxu1 %v1225_v18  ;;  %v1245_v15 = vpack.c.bf16 %v324_v12, %v320_v9  ;;  %v1215_v16 = vpack.c.bf16 %v321_v14, %v317_v13  ;;  %v323_v18 = vld [vmem:[%s2014_s2 + $0x370] sm:$0xff] }
  0x59   : > { %709 = vmatmul.mubr.f32.vlgmr.msra.gmra.mrb[2].mxu0 %v414_v22  ;;  %v1247_v20 = vpack.c.bf16 %v323_v18, %v319_v17 }
  0x5a   : > { %780 = vmatmul.mubr.f32.vlgmr.msra.gmra.mrb[2].mxu1 %v414_v22  ;;  %1196 = vmatpush1.bf16.msra.mxu0 %v1195_v19  ;;  %v326_v19 = vld [vmem:[%s2014_s2 + $0x388] sm:$0xff]  ;;  %v328_v22 = vld [vmem:[%s2014_s2 + $0x398] sm:$0xff] }
  0x5b   : > { %1228 = vmatpush1.bf16.msra.mxu1 %v1227_v23  ;;  %850 = vmatprep.mubr.f32.mxu0 %v1312_v11  ;;  %v332_v23 = vld [vmem:[%s2014_s2 + $0x3b8] sm:$0xff]  ;;  %v1217_v24 = vpack.c.bf16 %v330_v21, %v326_v19 }
  0x5c   : > { %1198 = vmatprep.subr.bf16.mxu0 %v1197_v27  ;;  %921 = vmatprep.mubr.f32.mxu1 %v1312_v11  ;;  %v293_v11 = vld [vmem:[%s2014_s2 + $0x280] sm:$0xff]  ;;  %v1249_v25 = vpack.c.bf16 %v332_v23, %v328_v22  ;;  %v413_v23 = vld [vmem:[#allocation2 + $0x8] sm:$0xff] }
  0x5d   : > { %1230 = vmatprep.subr.bf16.mxu1 %v1229_v31  ;;  %v1203_v43 = vpack.c.bf16 %v297_v41, %v293_v11  ;;  %v329_v27 = vld [vmem:[%s2014_s2 + $0x3a0] sm:$0xff]  ;;  %v338_v31 = vld [vmem:[%s2014_s2 + $0x3e8] sm:$0xff]  ;;  %v339_v11 = vld [vmem:[%s2014_s2 + $0x3f0] sm:$0xff]  ;;  %v1223_v41 = vpack.c.bf16 %v337_v38, %v333_v37 }
  0x5e   : > { %1200 = vmatpush1.bf16.msra.mxu0 %v1199_v32  ;;  %v1219_v32 = vpack.c.bf16 %v329_v27, %v325_v26  ;;  %v1221_v36 = vpack.c.bf16 %v338_v31, %v334_v30 }
  0x5f   : > { %1232 = vmatpush1.bf16.msra.mxu1 %v1231_v35  ;;  %1202 = vmatprep.subr.bf16.mxu0 %v1201_v39  ;;  %v1251_v35 = vpack.c.bf16 %v331_v29, %v327_v28  ;;  %v1253_v39 = vpack.c.bf16 %v340_v34, %v336_v33 }
  0x60   : > { %1234 = vmatprep.subr.bf16.mxu1 %v1233_v42  ;;  %v1255_v42 = vpack.c.bf16 %v339_v11, %v335_v40 }
  0x62   : > { %1204 = vmatpush1.bf16.msra.mxu0 %v1203_v43  ;;  %v425_v43 = vlaneseq }
  0x63   : > { %1236 = vmatpush1.bf16.msra.mxu1 %v1235_v46  ;;  %1206 = vmatprep.subr.bf16.mxu0 %v1205_v50  ;;  %v405_v46 = vld [vmem:[%s2015_s3] ss:$8 sm:$0xf] }
  0x64   : > { %1238 = vmatprep.subr.bf16.mxu1 %v1237_v56  ;;  %v426_v44 = vshrl.u32 %v425_v43, 7 }
  0x66   : > { %1208 = vmatpush1.bf16.msra.mxu0 %v1207_v57  ;;  %v1960_v45 = vsub.s32 0, %v426_v44  ;;  %v1965_v47 = vsub.s32 1, %v426_v44  ;;  %v1968_v50 = vsub.s32 2, %v426_v44  ;;  %v1976_v57 = vsub.s32 3, %v426_v44 }
  0x67   : > { %1240 = vmatpush1.bf16.msra.mxu1 %v1239_v58  ;;  %1210 = vmatprep.subr.bf16.mxu0 %v1209_v62 }
  0x68   : > { %1242 = vmatprep.subr.bf16.mxu1 %v1241_v2  ;;  %v428_v48 = vrot.slane %v405_v46, %v1960_v45  ;;  %v432_v51 = vrot.slane %v405_v46, %v1965_v47  ;;  %v436_v54 = vrot.slane %v405_v46, %v1968_v50  ;;  %v599_v56 = vrot.slane %v1053_v52, %v1960_v45 }
  0x69   : > { %v603_v59 = vrot.slane %v1053_v52, %v1965_v47  ;;  %v607_v7 = vrot.slane %v1053_v52, %v1968_v50  ;;  %v611_v13 = vrot.slane %v1053_v52, %v1976_v57 }
  0x6a   : > { %1212 = vmatpush1.bf16.msra.mxu0 %v1211_v3  ;;  %v440_v3 = vrot.slane %v405_v46, %v1976_v57 }
  0x6b   : > { %1244 = vmatpush1.bf16.msra.mxu1 %v1243_v6  ;;  %1214 = vmatprep.subr.bf16.mxu0 %v1213_v10 }
  0x6c   : > { %1246 = vmatprep.subr.bf16.mxu1 %v1245_v15 }
  0x6e   : > { %1216 = vmatpush1.bf16.msra.mxu0 %v1215_v16 }
  0x6f   : > { %1248 = vmatpush1.bf16.msra.mxu1 %v1247_v20  ;;  %1218 = vmatprep.subr.bf16.mxu0 %v1217_v24 }
  0x70   : > { %1250 = vmatprep.subr.bf16.mxu1 %v1249_v25 }
  0x72   : > { %1220 = vmatpush1.bf16.msra.mxu0 %v1219_v32  ;;  %v1054_v32 = vld [vmem:[%s2015_s3 + $0x2] ss:$8 sm:$0xf] }
  0x73   : > { %1252 = vmatpush1.bf16.msra.mxu1 %v1251_v35  ;;  %1222 = vmatprep.subr.bf16.mxu0 %v1221_v36  ;;  %v932_v33 = vrot.slane %v1054_v32, %v1960_v45  ;;  %v936_v34 = vrot.slane %v1054_v32, %v1965_v47  ;;  %v944_v43 = vrot.slane %v1054_v32, %v1976_v57 }
  0x74   : > { %1254 = vmatprep.subr.bf16.mxu1 %v1253_v39 }
  0x76   : > { %1224 = vmatpush1.bf16.msra.mxu0 %v1223_v41 }
  0x77   : > { %1256 = vmatpush1.bf16.msra.mxu1 %v1255_v42  ;;  %v940_v42 = vrot.slane %v1054_v32, %v1968_v50 }
  0xa7   : > { %v422_v49 = vpop.permute.xlu0 %421 }
  0xa8   : > { %v445_v53 = vmul.f32 %v428_v48, %v422_v49  ;;  %v446_v55 = vmul.f32 %v432_v51, %v422_v49  ;;  %v447_v63 = vmul.f32 %v436_v54, %v422_v49  ;;  %v448_v9 = vmul.f32 %v440_v3, %v422_v49 }
 0x10c   : > { %v515_v58 = vpop.f32.mrb[0].mxu0 }
 0x10d   : > { %v591_v60 = vadd.f32 %v515_v58, %v445_v53  ;;  %v586_v61 = vpop.f32.mrb[0].mxu1  ;;  %v517_v62 = vpop.f32.mrb[1].mxu0 }
 0x10e   : > { %v592_v0 = vadd.f32 %v517_v62, %v446_v55  ;;  %v588_v1 = vpop.f32.mrb[1].mxu1  ;;  %v593_v6 = vadd.f32 %v586_v61, %v447_v63  ;;  %v415_v55 = vld [vmem:[#allocation2 + $0x18] sm:$0xff]  ;;  %v410_v62 = vld [vmem:[%s2015_s3 + $0x3] ss:$0 sm:$0xff] }
 0x10f   : > { %v616_v2 = vadd.f32 %v599_v56, %v591_v60  ;;  %v594_v12 = vadd.f32 %v588_v1, %v448_v9  ;;  %v411_v1 = vld [vmem:[%s2015_s3 + $0xb] ss:$0 sm:$0xff] }
 0x110   : > { %v617_v4 = vadd.f32 %v603_v59, %v592_v0  ;;  %v618_v10 = vadd.f32 %v607_v7, %v593_v6 }
 0x111   : > { %v1056_v5 = vmul.f32 -1.442695, %v616_v2  ;;  %v619_v15 = vadd.f32 %v611_v13, %v594_v12 }
 0x112   : > { %v1057_v8 = vmul.f32 -1.442695, %v617_v4  ;;  %v1058_v14 = vmul.f32 -1.442695, %v618_v10 }
 0x113   : > { %1272 = vpow2.f32 %v1056_v5 }
 0x114   : > { %1274 = vpow2.f32 %v1057_v8 }
 0x115   : > { %1276 = vpow2.f32 %v1058_v14 }
 0x116   : > { %1278 = vtanh.f32 %v619_v15 }
 0x11d   : > { %v1273_v16 = vpop.eup %1272 }
 0x11e   : > { %v629_v17 = vadd.f32 1.0, %v1273_v16  ;;  %v1275_v18 = vpop.eup %1274 }
 0x11f   : > { %v630_v19 = vadd.f32 1.0, %v1275_v18  ;;  %v1277_v20 = vpop.eup %1276 }
 0x120   : > { %1280 = vrcp.f32 %v629_v17  ;;  %v1279_v21 = vpop.eup %1278  ;;  %v631_v26 = vadd.f32 1.0, %v1277_v20 }
 0x121   : > { %1282 = vrcp.f32 %v630_v19 }
 0x122   : > { %1284 = vrcp.f32 %v631_v26 }
 0x12a   : > { %v1281_v22 = vpop.eup %1280 }
 0x12b   : > { %v640_v24 = vmul.f32 %v1281_v22, %v1279_v21  ;;  %v1283_v25 = vpop.eup %1282 }
 0x12c   : > { %v639_v27 = vmul.f32 %v1283_v25, %v413_v23  ;;  %v1285_v29 = vpop.eup %1284 }
 0x12e   : > { %v641_v28 = vadd.f32 %v640_v24, %v639_v27 }
 0x130   : > { %1286 = vtanh.f32 %v641_v28  ;;  %983 = vst [vmem:[#allocation2 + $0x8] sm:$0xff] %v641_v28 }
 0x137   : > { %v991_v5 = vld [vmem:[#allocation2 + $0x8] sm:$0xff] (!%p1062_p5) }
 0x138   : > { %995 = vst [vmem:[%s2017_s5 + $0x8] sm:$0xff] (!%p1062_p5), %v991_v5 }
 0x13a   : > { %v1287_v30 = vpop.eup %1286 }
 0x13b   : > { %v643_v31 = vmul.f32 %v1287_v30, %v1285_v29 }
 0x13d   : > { %851 = vmatmul.mubr.f32.vlgmr.msra.gmra.mrb[2].mxu0 %v643_v31  ;;  %982 = vst [vmem:[#allocation2] sm:$0xff] %v643_v31  ;;  %922 = vmatmul.mubr.f32.vlgmr.msra.gmra.mrb[2].mxu1 %v643_v31 }
 0x144   : > { %v990_v4 = vld [vmem:[#allocation2] sm:$0xff] (!%p1062_p5) }
 0x145   : > { %994 = vst [vmem:[%s2017_s5] sm:$0xff] (!%p1062_p5), %v990_v4 }
 0x210   : > { %v852_v35 = vpop.f32.mrb[2].mxu0  ;;  %v923_v36 = vpop.f32.mrb[2].mxu1 }
 0x211   : > { %v949_v37 = vadd.f32 %v932_v33, %v852_v35  ;;  %v854_v38 = vpop.f32.mrb[3].mxu0  ;;  %v925_v39 = vpop.f32.mrb[3].mxu1  ;;  %v951_v44 = vadd.f32 %v940_v42, %v923_v36 }
 0x212   : > { %v950_v40 = vadd.f32 %v936_v34, %v854_v38  ;;  %v952_v46 = vadd.f32 %v944_v43, %v925_v39 }
 0x213   : > { %v1059_v11 = vmul.f32 -1.442695, %v949_v37  ;;  %v1061_v48 = vmul.f32 -1.442695, %v951_v44 }
 0x214   : > { %v1060_v41 = vmul.f32 -1.442695, %v950_v40 }
 0x215   : > { %1288 = vpow2.f32 %v1059_v11 }
 0x216   : > { %1290 = vpow2.f32 %v1060_v41 }
 0x217   : > { %1292 = vtanh.f32 %v952_v46 }
 0x218   : > { %1294 = vpow2.f32 %v1061_v48 }
 0x21f   : > { %v1289_v45 = vpop.eup %1288 }
 0x220   : > { %v962_v49 = vadd.f32 1.0, %v1289_v45  ;;  %v1291_v47 = vpop.eup %1290 }
 0x221   : > { %v963_v51 = vadd.f32 1.0, %v1291_v47  ;;  %v1293_v52 = vpop.eup %1292 }
 0x222   : > { %1296 = vrcp.f32 %v962_v49  ;;  %v1295_v53 = vpop.eup %1294 }
 0x223   : > { %1298 = vrcp.f32 %v963_v51  ;;  %v964_v58 = vadd.f32 1.0, %v1295_v53 }
 0x225   : > { %1300 = vrcp.f32 %v964_v58 }
 0x22c   : > { %v1297_v54 = vpop.eup %1296 }
 0x22d   : > { %v973_v56 = vmul.f32 %v1297_v54, %v1293_v52  ;;  %v1299_v50 = vpop.eup %1298 }
 0x22e   : > { %v972_v57 = vmul.f32 %v1299_v50, %v415_v55 }
 0x22f   : > { %v1301_v60 = vpop.eup %1300 }
 0x230   : > { %v974_v59 = vadd.f32 %v973_v56, %v972_v57 }
 0x232   : > { %985 = vst [vmem:[#allocation2 + $0x18] sm:$0xff] %v974_v59  ;;  %1302 = vtanh.f32 %v974_v59 }
 0x239   : > { %v993_v7 = vld [vmem:[#allocation2 + $0x18] sm:$0xff] (!%p1062_p5) }
 0x23a   : > { %997 = vst [vmem:[%s2017_s5 + $0x18] sm:$0xff] (!%p1062_p5), %v993_v7 }
 0x23c   : > { %v1303_v61 = vpop.eup %1302 }
 0x23d   : > { %v976_v63 = vmul.f32 %v1303_v61, %v1301_v60 }
 0x23f   : > { %v977_v0 = vmul.f32 %v976_v63, %v410_v62  ;;  %984 = vst [vmem:[#allocation2 + $0x10] sm:$0xff] %v976_v63 }
 0x241   : > { %978 = vadd.xlane.f32.xlu0 %v977_v0 }
 0x246   : > { %v992_v6 = vld [vmem:[#allocation2 + $0x10] sm:$0xff] (!%p1062_p5) }
 0x247   : > { %996 = vst [vmem:[%s2017_s5 + $0x10] sm:$0xff] (!%p1062_p5), %v992_v6 }
 0x2cb   : > { %989 = sbr.rel (%p1062_p5) target bundleno = 722 (0x2d2), region = 44 }
 0x2ce   : > { %v979_v2 = vpop.xlane.xlu0 %978 }
 0x2cf   : > { %v980_v3 = vadd.f32 %v979_v2, %v411_v1 }
 0x2d1   : > { %981 = vst [vmem:[%s1359_s24] sm:$0xff] %v980_v3 }
 0x2d2 PF: > { %s16_s18 = sadd.s32 1, %s1310_s18  }
 0x2d3   : > { %p13_p6 = scmp.ge.s32.totalorder %s16_s18, 10  }
 0x2d5   :  { %15 = sbr.rel (!%p13_p6) target bundleno = 1 (0x1), region = 82 }

</bundles_post_ra>
